<compile_context>
chip_gen: v5e
topology: v5e:2x2
jax: 0.10.0
libtpu: 0.0.40
codegen_flags: <defaults>
</compile_context>

<pallas_src>
import functools

import jax
import jax.numpy as jnp
from jax.experimental import pallas as pl
from jax.experimental.pallas import tpu as pltpu


def _round_up(a: int, b: int) -> int:
    return ((a + b - 1) // b) * b


def _cdiv(a: int, b: int) -> int:
    return (a + b - 1) // b


def lambdarank_kernel(x_ref, w1_ref, b1_ref, w2_ref, b2_ref, w3_ref, b3_ref, o_ref):
    """One (tm_p, pack*F) tile of lane-packed rows -> (tm_p, pack) scores."""
    cdt = w1_ref.dtype  # MXU operand dtype (bf16 by default, f32 optional)

    # In-kernel downcast of the streamed f32 rows (hides under the input DMA).
    x = x_ref[...].astype(cdt)

    # Layer 1 (block-diagonal): 128-lane-dense MXU matmul with f32 accumulation,
    # bias + ReLU on the VPU in f32 (v5e-safe).
    h = jnp.dot(x, w1_ref[...], preferred_element_type=jnp.float32)
    h = jnp.maximum(h + b1_ref[...], 0.0)

    # Layer 2 (block-diagonal).
    h = jnp.dot(h.astype(cdt), w2_ref[...], preferred_element_type=jnp.float32)
    h = jnp.maximum(h + b2_ref[...], 0.0)

    # Output layer (block-diagonal, `pack` columns wide).  b3 is a scalar in SMEM.
    y = jnp.dot(h.astype(cdt), w3_ref[...], preferred_element_type=jnp.float32)
    o_ref[...] = (y + b3_ref[0]).astype(o_ref.dtype)


@functools.partial(jax.jit, static_argnames=("block_rows", "compute_dtype"))
def lambdarank_net(x, params, *, block_rows=16384, compute_dtype=jnp.bfloat16):
    """Forward pass. x: (N, n_feature) float32. Returns (N, 1) float32."""
    N, F = x.shape
    H1 = params["w1"].shape[1]
    H2 = params["w2"].shape[1]

    # Lane-packing factor: put `pack` consecutive rows side by side so the last
    # (lane) dim of the streamed x blocks is a full 128.
    pack = 128 // F if (F <= 128 and 128 % F == 0) else 1

    # Pad only up to a multiple of `pack` (free when N % pack == 0) and to a
    # minimum of 8 packed rows for tiny batches; tile-level raggedness is
    # handled by the grid's partial final block, NOT by padding all of x.
    n_pad = _round_up(N, pack)
    if n_pad // pack < 8:
        n_pad = 8 * pack
    if n_pad != N:
        x = jnp.pad(x, ((0, n_pad - N), (0, 0)))
    npk = n_pad // pack                       # number of packed rows
    x_p = x.reshape(npk, pack * F)            # free, contiguous metadata reshape

    # Packed-row tile: large (amortise per-step overhead), VMEM-safe on v7x,
    # and capped so the grid keeps >= 2 steps when possible (dual-TC v7x).
    tm_p = max(8, block_rows // pack)
    tm_p = min(tm_p, _round_up(_cdiv(npk, 2), 8))
    tm_p = max(8, (tm_p // 8) * 8)
    num_steps = _cdiv(npk, tm_p)

    # Block-diagonal weights: kron(I_pack, W).  The off-diagonal zeros waste a
    # few MXU FLOPs, but the kernel is HBM-bound and they buy fully dense lanes
    # for every activation, epilogue op and store.
    f32 = jnp.float32
    eye = jnp.eye(pack, dtype=f32)
    w1_bd = jnp.kron(eye, params["w1"].astype(f32)).astype(compute_dtype)  # (pack*F,  pack*H1)
    w2_bd = jnp.kron(eye, params["w2"].astype(f32)).astype(compute_dtype)  # (pack*H1, pack*H2)
    w3_bd = jnp.kron(eye, params["w3"].astype(f32)).astype(compute_dtype)  # (pack*H2, pack)
    b1_t = jnp.tile(params["b1"].reshape(1, H1).astype(f32), (1, pack))    # (1, pack*H1)
    b2_t = jnp.tile(params["b2"].reshape(1, H2).astype(f32), (1, pack))    # (1, pack*H2)
    b3 = params["b3"].reshape(-1).astype(f32)                              # (1,) scalar

    out_p = pl.pallas_call(
        lambdarank_kernel,
        out_shape=jax.ShapeDtypeStruct((npk, pack), jnp.float32),
        grid=(num_steps,),
        in_specs=[
            pl.BlockSpec((tm_p, pack * F), lambda i: (i, 0)),         # packed x rows (streamed f32)
            pl.BlockSpec((pack * F, pack * H1), lambda i: (0, 0)),    # W1 block-diag (resident)
            pl.BlockSpec((1, pack * H1), lambda i: (0, 0)),           # b1 tiled
            pl.BlockSpec((pack * H1, pack * H2), lambda i: (0, 0)),   # W2 block-diag
            pl.BlockSpec((1, pack * H2), lambda i: (0, 0)),           # b2 tiled
            pl.BlockSpec((pack * H2, pack), lambda i: (0, 0)),        # W3 block-diag
            pl.BlockSpec(memory_space=pltpu.MemorySpace.SMEM),        # b3 scalar
        ],
        out_specs=pl.BlockSpec((tm_p, pack), lambda i: (i, 0)),
        compiler_params=pltpu.CompilerParams(
            dimension_semantics=("parallel",),
            vmem_limit_bytes=48 * 1024 * 1024,
        ),
    )(x_p, w1_bd, b1_t, w2_bd, b2_t, w3_bd, b3)

    # Row-major flatten of (npk, pack) restores the original row order.
    return out_p.reshape(-1)[:N].reshape(N, 1)


def init_params(key, n_feature, h1_units, h2_units):
    """Same shapes as the torch module (weights pre-transposed to (in, out))."""
    k1, k2, k3, k4, k5, k6 = jax.random.split(key, 6)

    def uniform(k, shape, fan_in):
        bound = 1.0 / jnp.sqrt(fan_in)
        return jax.random.uniform(k, shape, jnp.float32, -bound, bound)

    return {
        "w1": uniform(k1, (n_feature, h1_units), n_feature),
        "b1": uniform(k2, (1, h1_units), n_feature),
        "w2": uniform(k3, (h1_units, h2_units), h1_units),
        "b2": uniform(k4, (1, h2_units), h1_units),
        "w3": uniform(k5, (h2_units, 1), h2_units),
        "b3": uniform(k6, (1, 1), h2_units),
    }


def reference_f32(x, p):
    h = jnp.maximum(x @ p["w1"] + p["b1"], 0.0)
    h = jnp.maximum(h @ p["w2"] + p["b2"], 0.0)
    return h @ p["w3"] + p["b3"]


def reference_mixed(x, p, compute_dtype):
    """Mirror of the kernel's mixed-precision recipe, in plain JAX."""
    cdt = compute_dtype
    h = jnp.dot(x.astype(cdt), p["w1"].astype(cdt), preferred_element_type=jnp.float32)
    h = jnp.maximum(h + p["b1"], 0.0)
    h = jnp.dot(h.astype(cdt), p["w2"].astype(cdt), preferred_element_type=jnp.float32)
    h = jnp.maximum(h + p["b2"], 0.0)
    y = jnp.dot(h.astype(cdt), p["w3"].astype(cdt), preferred_element_type=jnp.float32)
    return y + p["b3"]


if __name__ == "__main__":
    # Small shapes consistent with the module.
    N, n_feature, h1_units, h2_units = 16, 32, 32, 16

    key = jax.random.PRNGKey(0)
    kx, kp = jax.random.split(key)
    x = jax.random.normal(kx, (N, n_feature), dtype=jnp.float32)
    params = init_params(kp, n_feature, h1_units, h2_units)

    out = jax.block_until_ready(lambdarank_net(x, params))
    assert out.shape == (N, 1)
    assert jnp.allclose(out, reference_mixed(x, params, jnp.bfloat16), atol=1e-3, rtol=1e-3), \
        "mismatch vs mixed-precision reference"
    assert jnp.allclose(out, reference_f32(x, params), atol=1e-1, rtol=1e-1), \
        "mismatch vs f32 reference"

    # Ragged batch (N not a multiple of the 4-row lane packing).
    x2 = jax.random.normal(jax.random.PRNGKey(1), (13, n_feature), dtype=jnp.float32)
    out2 = jax.block_until_ready(lambdarank_net(x2, params))
    assert out2.shape == (13, 1)
    assert jnp.allclose(out2, reference_mixed(x2, params, jnp.bfloat16), atol=1e-3, rtol=1e-3)

    # Multi-step grid + partial final block (250 packed rows over tiles of 128).
    x3 = jax.random.normal(jax.random.PRNGKey(2), (1000, n_feature), dtype=jnp.float32)
    out3 = jax.block_until_ready(lambdarank_net(x3, params))
    assert out3.shape == (1000, 1)
    assert jnp.allclose(out3, reference_mixed(x3, params, jnp.bfloat16), atol=1e-3, rtol=1e-3)

    print("KERNEL_OK")
</pallas_src>

<mosaic_0001>
module attributes {stable_mosaic.version = 11 : i64} {
  func.func @lambdarank_kernel(%arg0: i32, %arg1: memref<8x128xf32, #tpu.memory_space<vmem>>, %arg2: memref<128x128xbf16, #tpu.memory_space<vmem>>, %arg3: memref<1x128xf32, #tpu.memory_space<vmem>>, %arg4: memref<128x64xbf16, #tpu.memory_space<vmem>>, %arg5: memref<1x64xf32, #tpu.memory_space<vmem>>, %arg6: memref<64x4xbf16, #tpu.memory_space<vmem>>, %arg7: memref<1xf32, #tpu.memory_space<smem>>, %arg8: memref<8x4xf32, #tpu.memory_space<vmem>>) attributes {dimension_semantics = [#tpu.dimension_semantics<parallel>], iteration_bounds = array<i64: 1>, scalar_prefetch = 0 : i64, scratch_operands = 0 : i64, tpu.core_type = #tpu.core_type<tc>, window_params = [{transform_indices = @transform_0, window_bounds = array<i64: 8, 128>}, {pipeline_mode = #tpu.pipeline_mode<synchronous>, transform_indices = @transform_1, window_bounds = array<i64: 128, 128>}, {pipeline_mode = #tpu.pipeline_mode<synchronous>, transform_indices = @transform_2, window_bounds = array<i64: 1, 128>}, {pipeline_mode = #tpu.pipeline_mode<synchronous>, transform_indices = @transform_3, window_bounds = array<i64: 128, 64>}, {pipeline_mode = #tpu.pipeline_mode<synchronous>, transform_indices = @transform_4, window_bounds = array<i64: 1, 64>}, {pipeline_mode = #tpu.pipeline_mode<synchronous>, transform_indices = @transform_5, window_bounds = array<i64: 64, 4>}, {transform_indices = @transform_6, window_bounds = array<i64: 1>}, {transform_indices = @transform_7, window_bounds = array<i64: 8, 4>}]} {
    %c0 = arith.constant 0 : index
    %c0_0 = arith.constant 0 : index
    %0 = vector.load %arg1[%c0, %c0_0] : memref<8x128xf32, #tpu.memory_space<vmem>>, vector<8x128xf32>
    %1 = arith.truncf %0 : vector<8x128xf32> to vector<8x128xbf16>
    %c0_1 = arith.constant 0 : index
    %c0_2 = arith.constant 0 : index
    %2 = vector.load %arg2[%c0_1, %c0_2] : memref<128x128xbf16, #tpu.memory_space<vmem>>, vector<128x128xbf16>
    %cst = arith.constant dense<0.000000e+00> : vector<8x128xf32>
    %3 = tpu.matmul %1, %2, %cst {dimension_numbers = #tpu.dot_dimension_numbers<[1], [0], [0], [1], [0, 0, 1, 1], [], []>} : vector<8x128xbf16>, vector<128x128xbf16>, vector<8x128xf32> -> vector<8x128xf32>
    %c0_3 = arith.constant 0 : index
    %c0_4 = arith.constant 0 : index
    %4 = vector.load %arg3[%c0_3, %c0_4] : memref<1x128xf32, #tpu.memory_space<vmem>>, vector<1x128xf32>
    %5 = vector.broadcast %4 : vector<1x128xf32> to vector<8x128xf32>
    %6 = arith.addf %3, %5 : vector<8x128xf32>
    %cst_5 = arith.constant 0.000000e+00 : f32
    %7 = vector.broadcast %cst_5 : f32 to vector<8x128xf32>
    %8 = arith.maximumf %6, %7 : vector<8x128xf32>
    %9 = arith.truncf %8 : vector<8x128xf32> to vector<8x128xbf16>
    %c0_6 = arith.constant 0 : index
    %c0_7 = arith.constant 0 : index
    %10 = vector.load %arg4[%c0_6, %c0_7] : memref<128x64xbf16, #tpu.memory_space<vmem>>, vector<128x64xbf16>
    %cst_8 = arith.constant dense<0.000000e+00> : vector<8x64xf32>
    %11 = tpu.matmul %9, %10, %cst_8 {dimension_numbers = #tpu.dot_dimension_numbers<[1], [0], [0], [1], [0, 0, 1, 1], [], []>} : vector<8x128xbf16>, vector<128x64xbf16>, vector<8x64xf32> -> vector<8x64xf32>
    %c0_9 = arith.constant 0 : index
    %c0_10 = arith.constant 0 : index
    %12 = vector.load %arg5[%c0_9, %c0_10] : memref<1x64xf32, #tpu.memory_space<vmem>>, vector<1x64xf32>
    %13 = vector.broadcast %12 : vector<1x64xf32> to vector<8x64xf32>
    %14 = arith.addf %11, %13 : vector<8x64xf32>
    %cst_11 = arith.constant 0.000000e+00 : f32
    %15 = vector.broadcast %cst_11 : f32 to vector<8x64xf32>
    %16 = arith.maximumf %14, %15 : vector<8x64xf32>
    %17 = arith.truncf %16 : vector<8x64xf32> to vector<8x64xbf16>
    %c0_12 = arith.constant 0 : index
    %c0_13 = arith.constant 0 : index
    %18 = vector.load %arg6[%c0_12, %c0_13] : memref<64x4xbf16, #tpu.memory_space<vmem>>, vector<64x4xbf16>
    %cst_14 = arith.constant dense<0.000000e+00> : vector<8x4xf32>
    %19 = tpu.matmul %17, %18, %cst_14 {dimension_numbers = #tpu.dot_dimension_numbers<[1], [0], [0], [1], [0, 0, 1, 1], [], []>} : vector<8x64xbf16>, vector<64x4xbf16>, vector<8x4xf32> -> vector<8x4xf32>
    %c0_15 = arith.constant 0 : index
    %20 = memref.load %arg7[%c0_15] : memref<1xf32, #tpu.memory_space<smem>>
    %21 = vector.broadcast %20 : f32 to vector<8x4xf32>
    %22 = arith.addf %19, %21 : vector<8x4xf32>
    %c0_16 = arith.constant 0 : index
    %c0_17 = arith.constant 0 : index
    %23 = vector.load %arg8[%c0_16, %c0_17] : memref<8x4xf32, #tpu.memory_space<vmem>>, vector<8x4xf32>
    tpu.vector_store %arg8[%c0_16, %c0_17], %22 {strides = array<i32>} : memref<8x4xf32, #tpu.memory_space<vmem>>, vector<8x4xf32>,
    return
  }
  func.func @transform_0(%arg0: i32) -> (i32, i32) {
    %c0_i32 = arith.constant 0 : i32
    %c0_i32_0 = arith.constant 0 : i32
    return %arg0, %c0_i32 : i32, i32
  }
  func.func @transform_1(%arg0: i32) -> (i32, i32) {
    %c0_i32 = arith.constant 0 : i32
    %c0_i32_0 = arith.constant 0 : i32
    %c0_i32_1 = arith.constant 0 : i32
    return %c0_i32, %c0_i32_0 : i32, i32
  }
  func.func @transform_2(%arg0: i32) -> (i32, i32) {
    %c0_i32 = arith.constant 0 : i32
    %c0_i32_0 = arith.constant 0 : i32
    %c0_i32_1 = arith.constant 0 : i32
    return %c0_i32, %c0_i32_0 : i32, i32
  }
  func.func @transform_3(%arg0: i32) -> (i32, i32) {
    %c0_i32 = arith.constant 0 : i32
    %c0_i32_0 = arith.constant 0 : i32
    %c0_i32_1 = arith.constant 0 : i32
    return %c0_i32, %c0_i32_0 : i32, i32
  }
  func.func @transform_4(%arg0: i32) -> (i32, i32) {
    %c0_i32 = arith.constant 0 : i32
    %c0_i32_0 = arith.constant 0 : i32
    %c0_i32_1 = arith.constant 0 : i32
    return %c0_i32, %c0_i32_0 : i32, i32
  }
  func.func @transform_5(%arg0: i32) -> (i32, i32) {
    %c0_i32 = arith.constant 0 : i32
    %c0_i32_0 = arith.constant 0 : i32
    %c0_i32_1 = arith.constant 0 : i32
    return %c0_i32, %c0_i32_0 : i32, i32
  }
  func.func @transform_6(%arg0: i32) -> i32 {
    %c0_i32 = arith.constant 0 : i32
    %c0_i32_0 = arith.constant 0 : i32
    return %c0_i32 : i32
  }
  func.func @transform_7(%arg0: i32) -> (i32, i32) {
    %c0_i32 = arith.constant 0 : i32
    %c0_i32_0 = arith.constant 0 : i32
    return %arg0, %c0_i32 : i32, i32
  }
}

</mosaic_0001>

<bundles_post_ra>
// kernel: lambdarank_net.1
= control target key start
LH: loop header
LB: loop body
LE: loop exit
PB: predicated region body
PF: predicated region fallthrough
CT: control target
= control target key end

     0   :  { %vm230_vm0 = vcmask 523264   ;;  %vm247_vm1 = vcmask 31744   ;;  %s471_s1 = inlined_call_operand.vmem [shape: bf16[128,128], index: 1, kind: input, shape index: {}]   ;;  %s472_s3 = inlined_call_operand.vmem [shape: bf16[128,64], index: 3, kind: input, shape index: {}]   ;;  %s473_s2 = inlined_call_operand.vmem [shape: f32[1,128], index: 2, kind: input, shape index: {}]   ;;  %s474_s0 = inlined_call_operand.vmem [shape: f32[8,128], index: 0, kind: input, shape index: {}]   ;;  %s475_s4 = inlined_call_operand.vmem [shape: f32[1,64], index: 4, kind: input, shape index: {}]   ;;  %s476_s5 = inlined_call_operand.vmem [shape: bf16[64,4], index: 5, kind: input, shape index: {}]   ;;  %s477_s6 = inlined_call_operand.<no memory space> [shape: f32[1], index: 6, kind: input, shape index: {}]   ;;  %s478_s7 = inlined_call_operand.vmem [shape: f32[8,4], index: 7, kind: output, shape index: {}]  }
   0x1   :  { %v341_v0 = vld [vmem:[%s471_s1 + $0x38] sm:$0xff]  ;;  %v340_v1 = vld [vmem:[%s471_s1 + $0x30] sm:$0xff]  ;;  %v339_v4 = vld [vmem:[%s471_s1 + $0x28] sm:$0xff]  ;;  %v205_v34 = vstv %s477_s6 }
   0x2   :  { %98 = vmatpush.bf16.msra.mxu0 %v341_v0  ;;  %v349_v2 = vld [vmem:[%s472_s3 + $0x38] sm:$0xff]  ;;  %v348_v3 = vld [vmem:[%s472_s3 + $0x30] sm:$0xff]  ;;  %v347_v5 = vld [vmem:[%s472_s3 + $0x28] sm:$0xff] }
   0x3   :  { %181 = vmatpush.bf16.msra.mxu1 %v349_v2  ;;  %v338_v6 = vld [vmem:[%s471_s1 + $0x20] sm:$0xff]  ;;  %v337_v8 = vld [vmem:[%s471_s1 + $0x18] sm:$0xff]  ;;  %v336_v10 = vld [vmem:[%s471_s1 + $0x10] sm:$0xff] }
   0x4   :  { %v346_v7 = vld [vmem:[%s472_s3 + $0x20] sm:$0xff]  ;;  %v345_v9 = vld [vmem:[%s472_s3 + $0x18] sm:$0xff]  ;;  %v344_v11 = vld [vmem:[%s472_s3 + $0x10] sm:$0xff] }
   0x5   :  { %v335_v12 = vld [vmem:[%s471_s1 + $0x8] sm:$0xff]  ;;  %v334_v13 = vld [vmem:[%s471_s1] sm:$0xff]  ;;  %v353_v18 = vld [vmem:[%s476_s5 + $0x18] sm:$0xff] }
   0x6   :  { %99 = vmatpush.bf16.msra.mxu0 %v340_v1  ;;  %v28_v14 = vld [vmem:[%s474_s0] sm:$0xff]  ;;  %v343_v16 = vld [vmem:[%s472_s3 + $0x8] sm:$0xff]  ;;  %238 = vmatpush.bf16.msra.mxu2 %v353_v18  ;;  %v352_v19 = vld [vmem:[%s476_s5 + $0x10] sm:$0xff] }
   0x7   :  { %182 = vmatpush.bf16.msra.mxu1 %v348_v3  ;;  %v29_v15 = vpack.c.bf16 %v28_v14, %v28_v14  ;;  %v342_v17 = vld [vmem:[%s472_s3] sm:$0xff]  ;;  %v351_v26 = vld [vmem:[%s476_s5 + $0x8] sm:$0xff] }
   0x8   :  { %v354_v20 = vld [vmem:[%s473_s2] ss:$0 sm:$0xff] }
   0x9   :  { %v350_v27 = vld [vmem:[%s476_s5] sm:$0xff] }
   0xa   :  { %100 = vmatpush.bf16.msra.mxu0 %v339_v4  ;;  %239 = vmatpush.bf16.msra.mxu2 %v352_v19  ;;  %v355_v28 = vld [vmem:[%s475_s4] ss:$0 sm:$0xff] }
   0xb   :  { %183 = vmatpush.bf16.msra.mxu1 %v347_v5 }
   0xe   :  { %101 = vmatpush.bf16.msra.mxu0 %v338_v6  ;;  %240 = vmatpush.bf16.msra.mxu2 %v351_v26 }
   0xf   :  { %184 = vmatpush.bf16.msra.mxu1 %v346_v7 }
  0x12   :  { %102 = vmatpush.bf16.msra.mxu0 %v337_v8  ;;  %241 = vmatpush.bf16.msra.mxu2 %v350_v27 }
  0x13   :  { %185 = vmatpush.bf16.msra.mxu1 %v345_v9 }
  0x16   :  { %103 = vmatpush.bf16.msra.mxu0 %v336_v10 }
  0x17   :  { %186 = vmatpush.bf16.msra.mxu1 %v344_v11 }
  0x1a   :  { %104 = vmatpush.bf16.msra.mxu0 %v335_v12 }
  0x1b   :  { %187 = vmatpush.bf16.msra.mxu1 %v343_v16 }
  0x1e   :  { %105 = vmatpush.bf16.msra.mxu0 %v334_v13 }
  0x1f   :  { %188 = vmatpush.bf16.msra.mxu1 %v342_v17 }
  0x21   :  { %106 = vmatmul.bf16.vlgmr.msra.gmra.mxu0 %v29_v15 }
  0x9e   :  { %v107_v21 = vpop.f32.mrf.mxu0 }
  0x9f   :  { %v108_v22 = vadd.f32 %v354_v20, %v107_v21 }
  0xa1   :  { %v111_v23 = vmax.f32 %v108_v22, 0.0 }
  0xa3   :  { %v112_v24 = vpack.c.bf16 %v111_v23, %v111_v23 }
  0xa5   :  { %189 = vmatmul.bf16.vlgmr.msra.gmra.mxu1 %v112_v24 }
  0xa6   :  { %v109_v25 = vpop.f32.mrf.mxu0 }
 0x122   :  { %v190_v29 = vpop.f32.mrf.mxu1 }
 0x123   :  { %v191_v30 = vadd.f32 %v355_v28, %v190_v29 }
 0x125   :  { %v194_v31 = vmax.f32 %v191_v30, 0.0 }
 0x127   :  { %v195_v32 = vpack.c.bf16 %v194_v31, %v194_v31 }
 0x129   :  { %333 = vmatmul.msk.bf16.vlgmr.msra.gmra.mxu2 %vm230_vm0, %v195_v32 }
 0x12a   :  { %v192_v33 = vpop.f32.mrf.mxu1 }
 0x1ac   :  { %v243_v35 = vpop.f32.mrf.mxu2 }
 0x1ad   :  { %v244_v36 = vadd.f32 %v243_v35, %v205_v34 }
 0x1af   :  { %248 = vst.msk [vmem:[%s478_s7] sm:$0xff] %vm247_vm1, %v244_v36 }
 0x1b4   :  { %v245_v37 = vpop.f32.mrf.mxu2 }

</bundles_post_ra>
